<compile_context>
chip_gen: v5e
topology: v5e:2x2
jax: 0.10.0
libtpu: 0.0.40
codegen_flags: <defaults>
</compile_context>

<pallas_src>
import functools
import math

import jax
import jax.numpy as jnp
from jax.experimental import pallas as pl
from jax.experimental.pallas import tpu as pltpu


def _round_up(x: int, m: int) -> int:
    return ((x + m - 1) // m) * m


def _pad_2d(a, rows, cols, dtype):
    a = jnp.asarray(a).astype(dtype)
    r, c = a.shape
    if r == rows and c == cols:
        return a
    return jnp.pad(a, ((0, rows - r), (0, cols - c)))


def _tpu_vmem_bytes() -> int:
    """Physical per-TensorCore VMEM capacity (fallback: 128 MiB)."""
    try:
        info = pltpu.get_tpu_info()
        for name in ("vmem_capacity_bytes", "vmem_bytes", "vmem_size_bytes"):
            v = getattr(info, name, None)
            if v:
                return int(v)
    except Exception:
        pass
    return 128 << 20


def _gelu(h, approximate: bool):
    if approximate:
        # tanh form -> EUP slot (essentially free under the MXU on v6e/v7x).
        return jax.nn.gelu(h, approximate=True)
    # Exact erf form == torch.nn.GELU() default.
    return 0.5 * h * (1.0 + jax.lax.erf(h * (1.0 / math.sqrt(2.0))))


# ----------------------------- kernels ---------------------------------------


def _mlp_kernel_resident(x_ref, w1_ref, b1_ref, w2_ref, b2_ref, o_ref, *,
                         approximate_gelu: bool):
    # encoder: x @ W1 + b1 (MXU, f32 accumulate)
    h = jnp.dot(x_ref[...], w1_ref[...], preferred_element_type=jnp.float32)
    h = h + b1_ref[...].astype(jnp.float32)
    # dropout (eval -> identity), then GELU
    h = _gelu(h, approximate_gelu)
    # decoder: h @ W2 + b2, final ReLU
    h = h.astype(w2_ref.dtype)
    y = jnp.dot(h, w2_ref[...], preferred_element_type=jnp.float32)
    y = y + b2_ref[...].astype(jnp.float32)
    o_ref[...] = jnp.maximum(y, 0.0).astype(o_ref.dtype)


def _mlp_kernel_htiled(x_ref, w1_ref, b1_ref, w2_ref, b2_ref, o_ref, acc_ref, *,
                       approximate_gelu: bool):
    j = pl.program_id(1)

    @pl.when(j == 0)
    def _():
        acc_ref[...] = jnp.zeros_like(acc_ref)

    # per-hidden-chunk: (x @ W1[:, j] + b1[j]) -> GELU -> @ W2[j, :], accumulated.
    h = jnp.dot(x_ref[...], w1_ref[...], preferred_element_type=jnp.float32)
    h = h + b1_ref[...].astype(jnp.float32)
    h = _gelu(h, approximate_gelu)
    h = h.astype(w2_ref.dtype)
    acc_ref[...] += jnp.dot(h, w2_ref[...], preferred_element_type=jnp.float32)

    @pl.when(j == pl.num_programs(1) - 1)
    def _():
        y = acc_ref[...] + b2_ref[...].astype(jnp.float32)
        o_ref[...] = jnp.maximum(y, 0.0).astype(o_ref.dtype)


# ----------------------------- wrappers ---------------------------------------


def prepare_mlp_params(w1, b1, w2, b2, compute_dtype=jnp.bfloat16):
    """Pad lane dims to multiples of 128 and cast weights to the compute dtype ONCE.

    Reuse the returned dict across calls so the O(weights) pad/cast HBM traffic is
    not paid per forward call. Zero padding is exact (GELU(0)=0, padded W2 rows = 0).
    """
    w1 = jnp.asarray(w1)
    w2 = jnp.asarray(w2)
    d_in, d_hidden = w1.shape
    d_out = w2.shape[1]
    cdt = jnp.dtype(compute_dtype)
    d_in_p, d_h_p, d_out_p = (_round_up(d, 128) for d in (d_in, d_hidden, d_out))
    return {
        "w1": _pad_2d(w1, d_in_p, d_h_p, cdt),
        "b1": _pad_2d(jnp.asarray(b1).reshape(1, -1), 1, d_h_p, jnp.float32),
        "w2": _pad_2d(w2, d_h_p, d_out_p, cdt),
        "b2": _pad_2d(jnp.asarray(b2).reshape(1, -1), 1, d_out_p, jnp.float32),
        "dims": (d_in, d_hidden, d_out),
        "compute_dtype": cdt,
    }


def mlp_predictor_prepared(x, params, *, tb=None, hidden_block=None,
                           approximate_gelu=False, out_dtype=jnp.float32,
                           single_buffer_weights=True):
    """x: (B, d_input). params: output of prepare_mlp_params. Returns (B, d_out)."""
    d_in, d_hidden, d_out = params["dims"]
    cdt = params["compute_dtype"]
    w1p, b1p, w2p, b2p = params["w1"], params["b1"], params["w2"], params["b2"]
    d_in_p, d_h_p = w1p.shape
    d_out_p = w2p.shape[1]

    B = x.shape[0]
    assert x.shape[1] == d_in, "input feature dim mismatch"

    vmem_cap = _tpu_vmem_bytes()
    # ~56 MiB usable on v7x (64 MiB/TC), up to ~120 MiB on v5e/v6e (128 MiB).
    usable_vmem = min(vmem_cap - (8 << 20), 120 << 20)

    # Generation-aware batch tile: big on 128-MiB parts, smaller on v7x.
    if tb is None:
        tb = 512 if vmem_cap > (96 << 20) else 256
    tb = _round_up(max(8, min(tb, _round_up(B, 8))), 8)
    B_p = _round_up(B, tb)

    isz = jnp.dtype(cdt).itemsize
    osz = jnp.dtype(out_dtype).itemsize

    xp = x.astype(cdt)
    if (B_p, d_in_p) != (B, d_in):
        xp = jnp.pad(xp, ((0, B_p - B), (0, d_in_p - d_in)))

    weight_bytes = (d_in_p * d_h_p + d_h_p * d_out_p) * isz + (d_h_p + d_out_p) * 4

    # Decide whether the fully-resident path fits, else tile the hidden dim.
    if hidden_block is None:
        if weight_bytes <= 0.75 * usable_vmem:
            th = None
        else:
            th = 512 if d_h_p % 512 == 0 else (256 if d_h_p % 256 == 0 else 128)
    else:
        th = None if hidden_block >= d_h_p else int(hidden_block)
        if th is not None:
            assert d_h_p % th == 0, "hidden_block must divide padded d_hidden"

    cost = pl.CostEstimate(
        flops=2 * B_p * d_in_p * d_h_p + 2 * B_p * d_h_p * d_out_p,
        transcendentals=B_p * d_h_p,
        bytes_accessed=B_p * d_in_p * isz + weight_bytes + B_p * d_out_p * osz,
    )

    def build_and_run(single_buf):
        w_mode = {}
        if single_buf and hasattr(pl, "Buffered"):
            w_mode = {"pipeline_mode": pl.Buffered(1)}

        if th is None:
            # ---- all-weights-resident path ----
            grid = (B_p // tb,)
            in_specs = [
                pl.BlockSpec((tb, d_in_p), lambda i: (i, 0)),              # x streams
                pl.BlockSpec((d_in_p, d_h_p), lambda i: (0, 0), **w_mode),  # W1 resident
                pl.BlockSpec((1, d_h_p), lambda i: (0, 0), **w_mode),       # b1 resident
                pl.BlockSpec((d_h_p, d_out_p), lambda i: (0, 0), **w_mode),  # W2 resident
                pl.BlockSpec((1, d_out_p), lambda i: (0, 0), **w_mode),      # b2 resident
            ]
            out_specs = pl.BlockSpec((tb, d_out_p), lambda i: (i, 0))
            scratch = []
            dims_sem = ("parallel",)
            kern = functools.partial(_mlp_kernel_resident,
                                     approximate_gelu=approximate_gelu)
            bufs_w = 1 if w_mode else 2
            need = (bufs_w * weight_bytes
                    + 2 * tb * d_in_p * isz + 2 * tb * d_out_p * osz
                    + tb * d_h_p * 4)
        else:
            # ---- hidden-dim-tiled path (bounded VMEM, accumulator in scratch) ----
            grid = (B_p // tb, d_h_p // th)
            in_specs = [
                pl.BlockSpec((tb, d_in_p), lambda i, j: (i, 0)),
                pl.BlockSpec((d_in_p, th), lambda i, j: (0, j)),
                pl.BlockSpec((1, th), lambda i, j: (0, j)),
                pl.BlockSpec((th, d_out_p), lambda i, j: (j, 0)),
                pl.BlockSpec((1, d_out_p), lambda i, j: (0, 0), **w_mode),
            ]
            out_specs = pl.BlockSpec((tb, d_out_p), lambda i, j: (i, 0))
            scratch = [pltpu.VMEM((tb, d_out_p), jnp.float32)]
            dims_sem = ("parallel", "arbitrary")
            kern = functools.partial(_mlp_kernel_htiled,
                                     approximate_gelu=approximate_gelu)
            need = (2 * (d_in_p * th + th * d_out_p) * isz + 2 * (th + d_out_p) * 4
                    + 2 * tb * d_in_p * isz + 2 * tb * d_out_p * osz
                    + tb * d_out_p * 4 + tb * th * 4)

        vmem_limit = int(min(usable_vmem, max(32 << 20, int(1.5 * need))))

        return pl.pallas_call(
            kern,
            out_shape=jax.ShapeDtypeStruct((B_p, d_out_p), out_dtype),
            grid=grid,
            in_specs=in_specs,
            out_specs=out_specs,
            scratch_shapes=scratch,
            compiler_params=pltpu.CompilerParams(
                dimension_semantics=dims_sem,
                vmem_limit_bytes=vmem_limit,
            ),
            cost_estimate=cost,
        )(xp, w1p, b1p, w2p, b2p)

    if single_buffer_weights:
        try:
            out_p = build_and_run(True)
        except Exception:
            # Fallback: default double-buffered specs if Buffered(1) is unsupported.
            out_p = build_and_run(False)
    else:
        out_p = build_and_run(False)

    return out_p[:B, :d_out]


def mlp_predictor(x, w1, b1, w2, b2, *, compute_dtype=jnp.bfloat16, **kwargs):
    """Convenience wrapper (pads/casts weights per call). For repeated calls,
    use prepare_mlp_params() once + mlp_predictor_prepared()."""
    params = prepare_mlp_params(w1, b1, w2, b2, compute_dtype=compute_dtype)
    return mlp_predictor_prepared(x, params, **kwargs)


# ----------------------------- reference & test --------------------------------


def _reference(x, w1, b1, w2, b2):
    h = x @ w1 + b1
    h = 0.5 * h * (1.0 + jax.lax.erf(h / jnp.sqrt(2.0)))
    y = h @ w2 + b2
    return jnp.maximum(y, 0.0)


if __name__ == "__main__":
    key = jax.random.PRNGKey(0)

    # --- shapes consistent with MLPPredictor(d_input, d_hidden, d_out) ---
    B, d_input, d_hidden, d_out = 8, 16, 32, 8
    kx, kw1, kb1, kw2, kb2, kx2, kw1b, kb1b, kw2b, kb2b = jax.random.split(key, 10)

    x = jax.random.normal(kx, (B, d_input), dtype=jnp.float32)
    w1 = 0.02 * jax.random.normal(kw1, (d_input, d_hidden), dtype=jnp.float32)
    b1 = 0.02 * jax.random.normal(kb1, (1, d_hidden), dtype=jnp.float32)
    w2 = 0.02 * jax.random.normal(kw2, (d_hidden, d_out), dtype=jnp.float32)
    b2 = 0.02 * jax.random.normal(kb2, (1, d_out), dtype=jnp.float32)

    ref = _reference(x, w1, b1, w2, b2)

    # 1) exact path: f32 MXU matmuls, exact erf GELU, pre-prepared (cached) params.
    params_f32 = prepare_mlp_params(w1, b1, w2, b2, compute_dtype=jnp.float32)
    out_f32 = jax.block_until_ready(mlp_predictor_prepared(x, params_f32))
    assert out_f32.shape == (B, d_out)
    assert jnp.allclose(out_f32, ref, atol=1e-5, rtol=1e-5), "f32 kernel mismatch"

    # 2) fast path: bf16 MXU matmuls (f32 accumulate), tanh GELU (EUP), bf16 output.
    out_bf16 = jax.block_until_ready(
        mlp_predictor(x, w1, b1, w2, b2, compute_dtype=jnp.bfloat16,
                      approximate_gelu=True, out_dtype=jnp.bfloat16))
    assert out_bf16.shape == (B, d_out)
    assert jnp.allclose(out_bf16.astype(jnp.float32), ref, atol=5e-3, rtol=5e-2), \
        "bf16 kernel mismatch"

    # 3) hidden-dim-tiled fallback path (forced): d_hidden=256 split into th=128 chunks.
    d_hidden2 = 256
    x2 = jax.random.normal(kx2, (B, d_input), dtype=jnp.float32)
    w1b = 0.02 * jax.random.normal(kw1b, (d_input, d_hidden2), dtype=jnp.float32)
    b1b = 0.02 * jax.random.normal(kb1b, (1, d_hidden2), dtype=jnp.float32)
    w2b = 0.02 * jax.random.normal(kw2b, (d_hidden2, d_out), dtype=jnp.float32)
    b2b = 0.02 * jax.random.normal(kb2b, (1, d_out), dtype=jnp.float32)
    ref2 = _reference(x2, w1b, b1b, w2b, b2b)
    out_tiled = jax.block_until_ready(
        mlp_predictor(x2, w1b, b1b, w2b, b2b, compute_dtype=jnp.float32,
                      hidden_block=128))
    assert out_tiled.shape == (B, d_out)
    assert jnp.allclose(out_tiled, ref2, atol=1e-5, rtol=1e-5), \
        "hidden-tiled kernel mismatch"

    print("KERNEL_OK")
</pallas_src>

<mosaic_0001>
module attributes {stable_mosaic.version = 11 : i64} {
  func.func @_mlp_kernel_resident(%arg0: i32, %arg1: memref<8x128xf32, #tpu.memory_space<vmem>>, %arg2: memref<128x128xf32, #tpu.memory_space<vmem>>, %arg3: memref<1x128xf32, #tpu.memory_space<vmem>>, %arg4: memref<128x128xf32, #tpu.memory_space<vmem>>, %arg5: memref<1x128xf32, #tpu.memory_space<vmem>>, %arg6: memref<8x128xf32, #tpu.memory_space<vmem>>) attributes {dimension_semantics = [#tpu.dimension_semantics<parallel>], iteration_bounds = array<i64: 1>, scalar_prefetch = 0 : i64, scratch_operands = 0 : i64, tpu.core_type = #tpu.core_type<tc>, window_params = [{transform_indices = @transform_0, window_bounds = array<i64: 8, 128>}, {pipeline_mode = #tpu.pipeline_mode<synchronous>, transform_indices = @transform_1, window_bounds = array<i64: 128, 128>}, {pipeline_mode = #tpu.pipeline_mode<synchronous>, transform_indices = @transform_2, window_bounds = array<i64: 1, 128>}, {pipeline_mode = #tpu.pipeline_mode<synchronous>, transform_indices = @transform_3, window_bounds = array<i64: 128, 128>}, {pipeline_mode = #tpu.pipeline_mode<synchronous>, transform_indices = @transform_4, window_bounds = array<i64: 1, 128>}, {transform_indices = @transform_5, window_bounds = array<i64: 8, 128>}]} {
    %c0 = arith.constant 0 : index
    %c0_0 = arith.constant 0 : index
    %0 = vector.load %arg1[%c0, %c0_0] : memref<8x128xf32, #tpu.memory_space<vmem>>, vector<8x128xf32>
    %c0_1 = arith.constant 0 : index
    %c0_2 = arith.constant 0 : index
    %1 = vector.load %arg2[%c0_1, %c0_2] : memref<128x128xf32, #tpu.memory_space<vmem>>, vector<128x128xf32>
    %cst = arith.constant dense<0.000000e+00> : vector<8x128xf32>
    %2 = tpu.matmul %0, %1, %cst {dimension_numbers = #tpu.dot_dimension_numbers<[1], [0], [0], [1], [0, 0, 1, 1], [], []>} : vector<8x128xf32>, vector<128x128xf32>, vector<8x128xf32> -> vector<8x128xf32>
    %c0_3 = arith.constant 0 : index
    %c0_4 = arith.constant 0 : index
    %3 = vector.load %arg3[%c0_3, %c0_4] : memref<1x128xf32, #tpu.memory_space<vmem>>, vector<1x128xf32>
    %4 = vector.broadcast %3 : vector<1x128xf32> to vector<8x128xf32>
    %5 = arith.addf %2, %4 : vector<8x128xf32>
    %cst_5 = arith.constant 5.000000e-01 : f32
    %6 = vector.broadcast %cst_5 : f32 to vector<8x128xf32>
    %7 = arith.mulf %6, %5 : vector<8x128xf32>
    %cst_6 = arith.constant 0.707106769 : f32
    %8 = vector.broadcast %cst_6 : f32 to vector<8x128xf32>
    %9 = arith.mulf %5, %8 : vector<8x128xf32>
    %10 = math.erf %9 : vector<8x128xf32>
    %cst_7 = arith.constant 1.000000e+00 : f32
    %11 = vector.broadcast %cst_7 : f32 to vector<8x128xf32>
    %12 = arith.addf %11, %10 : vector<8x128xf32>
    %13 = arith.mulf %7, %12 : vector<8x128xf32>
    %c0_8 = arith.constant 0 : index
    %c0_9 = arith.constant 0 : index
    %14 = vector.load %arg4[%c0_8, %c0_9] : memref<128x128xf32, #tpu.memory_space<vmem>>, vector<128x128xf32>
    %cst_10 = arith.constant dense<0.000000e+00> : vector<8x128xf32>
    %15 = tpu.matmul %13, %14, %cst_10 {dimension_numbers = #tpu.dot_dimension_numbers<[1], [0], [0], [1], [0, 0, 1, 1], [], []>} : vector<8x128xf32>, vector<128x128xf32>, vector<8x128xf32> -> vector<8x128xf32>
    %c0_11 = arith.constant 0 : index
    %c0_12 = arith.constant 0 : index
    %16 = vector.load %arg5[%c0_11, %c0_12] : memref<1x128xf32, #tpu.memory_space<vmem>>, vector<1x128xf32>
    %17 = vector.broadcast %16 : vector<1x128xf32> to vector<8x128xf32>
    %18 = arith.addf %15, %17 : vector<8x128xf32>
    %cst_13 = arith.constant 0.000000e+00 : f32
    %19 = vector.broadcast %cst_13 : f32 to vector<8x128xf32>
    %20 = arith.maximumf %18, %19 : vector<8x128xf32>
    %c0_14 = arith.constant 0 : index
    %c0_15 = arith.constant 0 : index
    %21 = vector.load %arg6[%c0_14, %c0_15] : memref<8x128xf32, #tpu.memory_space<vmem>>, vector<8x128xf32>
    tpu.vector_store %arg6[%c0_14, %c0_15], %20 {strides = array<i32>} : memref<8x128xf32, #tpu.memory_space<vmem>>, vector<8x128xf32>,
    return
  }
  func.func @transform_0(%arg0: i32) -> (i32, i32) {
    %c0_i32 = arith.constant 0 : i32
    %c0_i32_0 = arith.constant 0 : i32
    return %arg0, %c0_i32 : i32, i32
  }
  func.func @transform_1(%arg0: i32) -> (i32, i32) {
    %c0_i32 = arith.constant 0 : i32
    %c0_i32_0 = arith.constant 0 : i32
    %c0_i32_1 = arith.constant 0 : i32
    return %c0_i32, %c0_i32_0 : i32, i32
  }
  func.func @transform_2(%arg0: i32) -> (i32, i32) {
    %c0_i32 = arith.constant 0 : i32
    %c0_i32_0 = arith.constant 0 : i32
    %c0_i32_1 = arith.constant 0 : i32
    return %c0_i32, %c0_i32_0 : i32, i32
  }
  func.func @transform_3(%arg0: i32) -> (i32, i32) {
    %c0_i32 = arith.constant 0 : i32
    %c0_i32_0 = arith.constant 0 : i32
    %c0_i32_1 = arith.constant 0 : i32
    return %c0_i32, %c0_i32_0 : i32, i32
  }
  func.func @transform_4(%arg0: i32) -> (i32, i32) {
    %c0_i32 = arith.constant 0 : i32
    %c0_i32_0 = arith.constant 0 : i32
    %c0_i32_1 = arith.constant 0 : i32
    return %c0_i32, %c0_i32_0 : i32, i32
  }
  func.func @transform_5(%arg0: i32) -> (i32, i32) {
    %c0_i32 = arith.constant 0 : i32
    %c0_i32_0 = arith.constant 0 : i32
    return %arg0, %c0_i32 : i32, i32
  }
}

module attributes {stable_mosaic.version = 11 : i64} {
  func.func @_mlp_kernel_resident(%arg0: i32, %arg1: memref<8x128xf32, #tpu.memory_space<vmem>>, %arg2: memref<128x128xf32, #tpu.memory_space<vmem>>, %arg3: memref<1x128xf32, #tpu.memory_space<vmem>>, %arg4: memref<128x128xf32, #tpu.memory_space<vmem>>, %arg5: memref<1x128xf32, #tpu.memory_space<vmem>>, %arg6: memref<8x128xf32, #tpu.memory_space<vmem>>) attributes {dimension_semantics = [#tpu.dimension_semantics<parallel>], iteration_bounds = array<i64: 1>, scalar_prefetch = 0 : i64, scratch_operands = 0 : i64, tpu.core_type = #tpu.core_type<tc>, window_params = [{transform_indices = @transform_0, window_bounds = array<i64: 8, 128>}, {pipeline_mode = #tpu.pipeline_mode<synchronous>, transform_indices = @transform_1, window_bounds = array<i64: 128, 128>}, {pipeline_mode = #tpu.pipeline_mode<synchronous>, transform_indices = @transform_2, window_bounds = array<i64: 1, 128>}, {pipeline_mode = #tpu.pipeline_mode<synchronous>, transform_indices = @transform_3, window_bounds = array<i64: 128, 128>}, {pipeline_mode = #tpu.pipeline_mode<synchronous>, transform_indices = @transform_4, window_bounds = array<i64: 1, 128>}, {transform_indices = @transform_5, window_bounds = array<i64: 8, 128>}]} {
    %c0 = arith.constant 0 : index
    %c0_0 = arith.constant 0 : index
    %0 = vector.load %arg1[%c0, %c0_0] : memref<8x128xf32, #tpu.memory_space<vmem>>, vector<8x128xf32>
    %c0_1 = arith.constant 0 : index
    %c0_2 = arith.constant 0 : index
    %1 = vector.load %arg2[%c0_1, %c0_2] : memref<128x128xf32, #tpu.memory_space<vmem>>, vector<128x128xf32>
    %cst = arith.constant dense<0.000000e+00> : vector<8x128xf32>
    %2 = tpu.matmul %0, %1, %cst {dimension_numbers = #tpu.dot_dimension_numbers<[1], [0], [0], [1], [0, 0, 1, 1], [], []>} : vector<8x128xf32>, vector<128x128xf32>, vector<8x128xf32> -> vector<8x128xf32>
    %c0_3 = arith.constant 0 : index
    %c0_4 = arith.constant 0 : index
    %3 = vector.load %arg3[%c0_3, %c0_4] : memref<1x128xf32, #tpu.memory_space<vmem>>, vector<1x128xf32>
    %4 = vector.broadcast %3 : vector<1x128xf32> to vector<8x128xf32>
    %5 = arith.addf %2, %4 : vector<8x128xf32>
    %cst_5 = arith.constant 5.000000e-01 : f32
    %6 = vector.broadcast %cst_5 : f32 to vector<8x128xf32>
    %7 = arith.mulf %6, %5 : vector<8x128xf32>
    %cst_6 = arith.constant 0.707106769 : f32
    %8 = vector.broadcast %cst_6 : f32 to vector<8x128xf32>
    %9 = arith.mulf %5, %8 : vector<8x128xf32>
    %10 = math.erf %9 : vector<8x128xf32>
    %cst_7 = arith.constant 1.000000e+00 : f32
    %11 = vector.broadcast %cst_7 : f32 to vector<8x128xf32>
    %12 = arith.addf %11, %10 : vector<8x128xf32>
    %13 = arith.mulf %7, %12 : vector<8x128xf32>
    %c0_8 = arith.constant 0 : index
    %c0_9 = arith.constant 0 : index
    %14 = vector.load %arg4[%c0_8, %c0_9] : memref<128x128xf32, #tpu.memory_space<vmem>>, vector<128x128xf32>
    %cst_10 = arith.constant dense<0.000000e+00> : vector<8x128xf32>
    %15 = tpu.matmul %13, %14, %cst_10 {dimension_numbers = #tpu.dot_dimension_numbers<[1], [0], [0], [1], [0, 0, 1, 1], [], []>} : vector<8x128xf32>, vector<128x128xf32>, vector<8x128xf32> -> vector<8x128xf32>
    %c0_11 = arith.constant 0 : index
    %c0_12 = arith.constant 0 : index
    %16 = vector.load %arg5[%c0_11, %c0_12] : memref<1x128xf32, #tpu.memory_space<vmem>>, vector<1x128xf32>
    %17 = vector.broadcast %16 : vector<1x128xf32> to vector<8x128xf32>
    %18 = arith.addf %15, %17 : vector<8x128xf32>
    %cst_13 = arith.constant 0.000000e+00 : f32
    %19 = vector.broadcast %cst_13 : f32 to vector<8x128xf32>
    %20 = arith.maximumf %18, %19 : vector<8x128xf32>
    %c0_14 = arith.constant 0 : index
    %c0_15 = arith.constant 0 : index
    %21 = vector.load %arg6[%c0_14, %c0_15] : memref<8x128xf32, #tpu.memory_space<vmem>>, vector<8x128xf32>
    tpu.vector_store %arg6[%c0_14, %c0_15], %20 {strides = array<i32>} : memref<8x128xf32, #tpu.memory_space<vmem>>, vector<8x128xf32>,
    return
  }
  func.func @transform_0(%arg0: i32) -> (i32, i32) {
    %c0_i32 = arith.constant 0 : i32
    %c0_i32_0 = arith.constant 0 : i32
    return %arg0, %c0_i32 : i32, i32
  }
  func.func @transform_1(%arg0: i32) -> (i32, i32) {
    %c0_i32 = arith.constant 0 : i32
    %c0_i32_0 = arith.constant 0 : i32
    %c0_i32_1 = arith.constant 0 : i32
    return %c0_i32, %c0_i32_0 : i32, i32
  }
  func.func @transform_2(%arg0: i32) -> (i32, i32) {
    %c0_i32 = arith.constant 0 : i32
    %c0_i32_0 = arith.constant 0 : i32
    %c0_i32_1 = arith.constant 0 : i32
    return %c0_i32, %c0_i32_0 : i32, i32
  }
  func.func @transform_3(%arg0: i32) -> (i32, i32) {
    %c0_i32 = arith.constant 0 : i32
    %c0_i32_0 = arith.constant 0 : i32
    %c0_i32_1 = arith.constant 0 : i32
    return %c0_i32, %c0_i32_0 : i32, i32
  }
  func.func @transform_4(%arg0: i32) -> (i32, i32) {
    %c0_i32 = arith.constant 0 : i32
    %c0_i32_0 = arith.constant 0 : i32
    %c0_i32_1 = arith.constant 0 : i32
    return %c0_i32, %c0_i32_0 : i32, i32
  }
  func.func @transform_5(%arg0: i32) -> (i32, i32) {
    %c0_i32 = arith.constant 0 : i32
    %c0_i32_0 = arith.constant 0 : i32
    return %arg0, %c0_i32 : i32, i32
  }
}

</mosaic_0001>

<bundles_post_ra>
// kernel: tpu_custom_call.1
= control target key start
LH: loop header
LB: loop body
LE: loop exit
PB: predicated region body
PF: predicated region fallthrough
CT: control target
= control target key end

     0   :  { %10 = vsyncpa [#allocation3], 0  ;;  %s378_s0 = inlined_call_operand.hbm [shape: f32[8,128], index: 0, kind: input, shape index: {}]   ;;  %s379_s1 = inlined_call_operand.hbm [shape: f32[128,128], index: 1, kind: input, shape index: {}]   ;;  %s380_s2 = inlined_call_operand.vmem [shape: f32[1,128], index: 2, kind: input, shape index: {}]   ;;  %s381_s3 = inlined_call_operand.hbm [shape: f32[128,128], index: 3, kind: input, shape index: {}]   ;;  %s382_s4 = inlined_call_operand.vmem [shape: f32[1,128], index: 4, kind: input, shape index: {}]   ;;  %s383_s5 = inlined_call_operand.hbm [shape: f32[8,128], index: 5, kind: output, shape index: {}]  }
   0x1   :  { %11 = vsyncpa [#allocation6], 0  ;;  %s28_s20 = sshll.u32 %s379_s1, 4  ;;  %s29_s20 = int_to_ptr.hbm [resolvable:$true] %s28_s20 }
   0x2   :  { %12 = vsyncpa [#allocation4], 0  ;;  %s324_s21 = smov [#allocation5]   ;;  %s18_s25 = sshll.u32 %s378_s0, 4  ;;  %s19_s25 = int_to_ptr.hbm [resolvable:$true] %s18_s25 }
   0x3   :  { %s30_s22 = sshll.u32 %s324_s21, 4  ;;  %s325_s26 = smov 128   ;;  %s31_s22 = int_to_ptr.vmem [resolvable:$true] %s30_s22 }
   0x4   :  { %s326_s27 = smov 8   ;;  %s327_s28 = smov [#allocation2]  }
   0x5   :  { %36 = dma.hbm_to_vmem [thread:$0]  %s29_s20, 2048, %s31_s22, [#allocation6], %s325_s26, %s325_s26, %s326_s27  }
   0x6   :  { %s20_s29 = sshll.u32 %s327_s28, 4  ;;  %s43_s7 = sshll.u32 %s381_s3, 4  ;;  %s21_s29 = int_to_ptr.vmem [resolvable:$true] %s20_s29  ;;  %s44_s7 = int_to_ptr.hbm [resolvable:$true] %s43_s7 }
   0x7   :  { %23 = dma.hbm_to_vmem [thread:$0]  %s19_s25, 128, %s21_s29, [#allocation3]  }
   0x8   :  { %s328_s1 = smov [#allocation7]  }
   0x9   :  { %s45_s8 = sshll.u32 %s328_s1, 4  ;;  %s46_s8 = int_to_ptr.vmem [resolvable:$true] %s45_s8 }
   0xa   :  { %51 = dma.hbm_to_vmem [thread:$0]  %s44_s7, 2048, %s46_s8, [#allocation6], %s325_s26, %s325_s26, %s326_s27  }
   0xb   :  { %318 = dma.done.wait [#allocation3], 128  }
   0xc   :  { %319 = vsyncadd [#allocation3], 4294967168 }
   0xd   :  { %320 = dma.done.wait [#allocation6], 4096  }
   0xe   :  { %321 = vsyncadd [#allocation6], 4294963200  ;;  %v82_v0 = vld [vmem:[#allocation5 + $0x78] sm:$0xff]  ;;  %v81_v1 = vld [vmem:[#allocation5 + $0x70] sm:$0xff]  ;;  %s329_s10 = smov [#allocation8]   ;;  %s200_s14 = sshll.u32 %s383_s5, 4  ;;  %s201_s14 = int_to_ptr.hbm [resolvable:$true] %s200_s14 }
   0xf   :  { %87 = vmatpush.msra.mxu0 %v82_v0  ;;  %v80_v2 = vld [vmem:[#allocation5 + $0x68] sm:$0xff]  ;;  %v79_v3 = vld [vmem:[#allocation5 + $0x60] sm:$0xff]  ;;  %v78_v4 = vld [vmem:[#allocation5 + $0x58] sm:$0xff]  ;;  %s198_s11 = sshll.u32 %s329_s10, 4  ;;  %s199_s11 = int_to_ptr.vmem [resolvable:$true] %s198_s11 }
  0x10   :  { %v77_v5 = vld [vmem:[#allocation5 + $0x50] sm:$0xff]  ;;  %v76_v6 = vld [vmem:[#allocation5 + $0x48] sm:$0xff]  ;;  %v75_v7 = vld [vmem:[#allocation5 + $0x40] sm:$0xff] }
  0x11   :  { %88 = vmatpush.msra.mxu0 %v81_v1  ;;  %v74_v8 = vld [vmem:[#allocation5 + $0x38] sm:$0xff]  ;;  %v73_v9 = vld [vmem:[#allocation5 + $0x30] sm:$0xff]  ;;  %v72_v10 = vld [vmem:[#allocation5 + $0x28] sm:$0xff] }
  0x12   :  { %v71_v11 = vld [vmem:[#allocation5 + $0x20] sm:$0xff]  ;;  %v70_v12 = vld [vmem:[#allocation5 + $0x18] sm:$0xff]  ;;  %v69_v13 = vld [vmem:[#allocation5 + $0x10] sm:$0xff] }
  0x13   :  { %89 = vmatpush.msra.mxu0 %v80_v2  ;;  %v68_v14 = vld [vmem:[#allocation5 + $0x8] sm:$0xff]  ;;  %v67_v15 = vld [vmem:[#allocation5] sm:$0xff]  ;;  %v66_v16 = vld [vmem:[#allocation2] sm:$0xff] }
  0x14   :  { %v166_v17 = vld [vmem:[#allocation7 + $0x78] sm:$0xff]  ;;  %v165_v18 = vld [vmem:[#allocation7 + $0x70] sm:$0xff]  ;;  %v164_v19 = vld [vmem:[#allocation7 + $0x68] sm:$0xff] }
  0x15   :  { %90 = vmatpush.msra.mxu0 %v79_v3  ;;  %171 = vmatpush.msra.mxu1 %v166_v17  ;;  %v163_v20 = vld [vmem:[#allocation7 + $0x60] sm:$0xff]  ;;  %v218_v21 = vld [vmem:[%s380_s2] ss:$0 sm:$0xff]  ;;  %v161_v23 = vld [vmem:[#allocation7 + $0x50] sm:$0xff] }
  0x16   :  { %v162_v22 = vld [vmem:[#allocation7 + $0x58] sm:$0xff]  ;;  %v160_v25 = vld [vmem:[#allocation7 + $0x48] sm:$0xff]  ;;  %v159_v27 = vld [vmem:[#allocation7 + $0x40] sm:$0xff] }
  0x17   :  { %91 = vmatpush.msra.mxu0 %v78_v4  ;;  %172 = vmatpush.msra.mxu1 %v165_v18  ;;  %v158_v29 = vld [vmem:[#allocation7 + $0x38] sm:$0xff]  ;;  %v157_v31 = vld [vmem:[#allocation7 + $0x30] sm:$0xff]  ;;  %v156_v33 = vld [vmem:[#allocation7 + $0x28] sm:$0xff] }
  0x18   :  { %v155_v36 = vld [vmem:[#allocation7 + $0x20] sm:$0xff]  ;;  %v154_v39 = vld [vmem:[#allocation7 + $0x18] sm:$0xff]  ;;  %v153_v42 = vld [vmem:[#allocation7 + $0x10] sm:$0xff] }
  0x19   :  { %92 = vmatpush.msra.mxu0 %v77_v5  ;;  %173 = vmatpush.msra.mxu1 %v164_v19  ;;  %v152_v45 = vld [vmem:[#allocation7 + $0x8] sm:$0xff]  ;;  %v151_v47 = vld [vmem:[#allocation7] sm:$0xff] }
  0x1b   :  { %93 = vmatpush.msra.mxu0 %v76_v6  ;;  %174 = vmatpush.msra.mxu1 %v163_v20 }
  0x1d   :  { %94 = vmatpush.msra.mxu0 %v75_v7  ;;  %175 = vmatpush.msra.mxu1 %v162_v22 }
  0x1f   :  { %95 = vmatpush.msra.mxu0 %v74_v8  ;;  %176 = vmatpush.msra.mxu1 %v161_v23 }
  0x21   :  { %96 = vmatpush.msra.mxu0 %v73_v9  ;;  %177 = vmatpush.msra.mxu1 %v160_v25 }
  0x23   :  { %97 = vmatpush.msra.mxu0 %v72_v10  ;;  %178 = vmatpush.msra.mxu1 %v159_v27 }
  0x25   :  { %98 = vmatpush.msra.mxu0 %v71_v11  ;;  %179 = vmatpush.msra.mxu1 %v158_v29  ;;  %v219_v11 = vld [vmem:[%s382_s4] ss:$0 sm:$0xff] }
  0x27   :  { %99 = vmatpush.msra.mxu0 %v70_v12  ;;  %180 = vmatpush.msra.mxu1 %v157_v31 }
  0x29   :  { %100 = vmatpush.msra.mxu0 %v69_v13  ;;  %181 = vmatpush.msra.mxu1 %v156_v33 }
  0x2b   :  { %101 = vmatpush.msra.mxu0 %v68_v14  ;;  %182 = vmatpush.msra.mxu1 %v155_v36 }
  0x2d   :  { %102 = vmatpush.msra.mxu0 %v67_v15  ;;  %183 = vmatpush.msra.mxu1 %v154_v39 }
  0x2e   :  { %103 = vmatmul.f32.vlgmr.msra.gmra.mxu0 %v66_v16 }
  0x2f   :  { %184 = vmatpush.msra.mxu1 %v153_v42 }
  0x31   :  { %185 = vmatpush.msra.mxu1 %v152_v45 }
  0x33   :  { %186 = vmatpush.msra.mxu1 %v151_v47 }
  0xab   :  { %v104_v24 = vpop.f32.mrf.mxu0 }
  0xac   :  { %v105_v26 = vadd.f32 %v218_v21, %v104_v24 }
  0xae   :  { %v108_v28 = vmul.f32 0.70710677, %v105_v26  ;;  %v107_v8 = vmul.f32 0.5, %v105_v26 }
  0xb0   :  { %v109_v30 = vmul.f32 %v108_v28, %v108_v28 }
  0xb2   :  { %v110_v32 = vmin.f32 %v109_v30, 16.0 }
  0xb4   :  { %v111_v34 = vmul.f32 2.1237322e-06, %v110_v32  ;;  %v122_v35 = vmul.f32 3.8918573e-05, %v110_v32 }
  0xb6   :  { %v112_v37 = vadd.f32 0.00028619796, %v111_v34  ;;  %v123_v38 = vadd.f32 0.001143296, %v122_v35 }
  0xb8   :  { %v113_v40 = vmul.f32 %v112_v37, %v110_v32  ;;  %v124_v41 = vmul.f32 %v123_v38, %v110_v32 }
  0xba   :  { %v125_v43 = vadd.f32 0.014752088, %v124_v41  ;;  %v114_v44 = vadd.f32 0.0036580483, %v113_v40 }
  0xbc   :  { %v126_v46 = vmul.f32 %v125_v43, %v110_v32  ;;  %v115_v49 = vmul.f32 %v114_v44, %v110_v32 }
  0xbe   :  { %v127_v48 = vadd.f32 0.112945676, %v126_v46  ;;  %v116_v52 = vadd.f32 0.05243302, %v115_v49 }
  0xc0   :  { %v128_v50 = vmul.f32 %v127_v48, %v110_v32  ;;  %v117_v55 = vmul.f32 %v116_v52, %v110_v32 }
  0xc2   :  { %v129_v51 = vadd.f32 0.4994258, %v128_v50  ;;  %v118_v56 = vadd.f32 0.18741608, %v117_v55 }
  0xc4   :  { %v130_v53 = vmul.f32 %v129_v51, %v110_v32  ;;  %v119_v58 = vmul.f32 %v118_v56, %v110_v32 }
  0xc6   :  { %v131_v54 = vadd.f32 1.0, %v130_v53  ;;  %v120_v62 = vadd.f32 1.1283791, %v119_v58 }
  0xc8   :  { %220 = vrcp.f32 %v131_v54  ;;  %v143_v61 = vand.u32 2147483648, %v131_v54  ;;  %v141_v0 = vand.u32 2147483647, %v131_v54  ;;  %vm137_vm1 = vweird.f32 %v131_v54 }
  0xc9   :  { %v121_v3 = vmul.f32 %v120_v62, %v108_v28 }
  0xca   :  { %v144_v2 = vor.u32 1.1754944e-38, %v143_v61  ;;  %vm142_vm3 = vcmp.eq.f32.partialorder %v141_v0, 8.507059e+37 }
  0xce   :  { %v221_v57 = vpop.eup %220 }
  0xcf   :  { %v133_v59 = vmul.f32 %v221_v57, %v131_v54  ;;  %vm138_vm0 = vweird.f32 %v221_v57 }
  0xd0   :  { %vm139_vm2 = vmor %vm137_vm1, %vm138_vm0 }
  0xd1   :  { %v134_v60 = vsub.f32 1.0, %v133_v59 }
  0xd3   :  { %v135_v63 = vmul.f32 %v221_v57, %v134_v60 }
  0xd5   :  { %v136_v1 = vadd.f32 %v221_v57, %v135_v63 }
  0xd7   :  { %v140_v4 = vsel %vm139_vm2, %v221_v57, %v136_v1 }
  0xd8   :  { %v145_v5 = vsel %vm142_vm3, %v144_v2, %v140_v4 }
  0xd9   :  { %v146_v6 = vmul.f32 %v145_v5, %v121_v3 }
  0xdb   :  { %v211_v7 = vclamps-f32 %v146_v6, 1.0 }
  0xdd   :  { %v149_v9 = vadd.f32 1.0, %v211_v7 }
  0xdf   :  { %v150_v10 = vmul.f32 %v149_v9, %v107_v8 }
  0xe1   :  { %187 = vmatmul.f32.vlgmr.msra.gmra.mxu1 %v150_v10 }
 0x15e   :  { %v188_v12 = vpop.f32.mrf.mxu1 }
 0x15f   :  { %v189_v13 = vadd.f32 %v219_v11, %v188_v12 }
 0x161   :  { %v191_v14 = vmax.f32 %v189_v13, 0.0 }
 0x163   :  { %192 = vst [vmem:[#allocation8] sm:$0xff] %v191_v14 }
 0x164   :  { %203 = dma.vmem_to_hbm [thread:$0]  %s199_s11, 128, %s201_s14, [#allocation4]  }
 0x165   :  { %322 = dma.done.wait [#allocation4], 128  }
 0x166   :  { %323 = vsyncadd [#allocation4], 4294967168 }
 0x167   :  { %208 = vsyncpa [#allocation3], 1 }
 0x168   :  { %209 = vsyncpa [#allocation6], 1 }
 0x169   :  { %210 = vsyncpa [#allocation4], 1 }

// kernel: tpu_custom_call.1
= control target key start
LH: loop header
LB: loop body
LE: loop exit
PB: predicated region body
PF: predicated region fallthrough
CT: control target
= control target key end

     0   :  { %10 = vsyncpa [#allocation3], 0  ;;  %s378_s0 = inlined_call_operand.hbm [shape: f32[8,128], index: 0, kind: input, shape index: {}]   ;;  %s379_s1 = inlined_call_operand.hbm [shape: f32[128,128], index: 1, kind: input, shape index: {}]   ;;  %s380_s2 = inlined_call_operand.vmem [shape: f32[1,128], index: 2, kind: input, shape index: {}]   ;;  %s381_s3 = inlined_call_operand.hbm [shape: f32[128,128], index: 3, kind: input, shape index: {}]   ;;  %s382_s4 = inlined_call_operand.vmem [shape: f32[1,128], index: 4, kind: input, shape index: {}]   ;;  %s383_s5 = inlined_call_operand.hbm [shape: f32[8,128], index: 5, kind: output, shape index: {}]  }
   0x1   :  { %11 = vsyncpa [#allocation6], 0  ;;  %s28_s20 = sshll.u32 %s379_s1, 4  ;;  %s29_s20 = int_to_ptr.hbm [resolvable:$true] %s28_s20 }
   0x2   :  { %12 = vsyncpa [#allocation4], 0  ;;  %s324_s21 = smov [#allocation5]   ;;  %s18_s25 = sshll.u32 %s378_s0, 4  ;;  %s19_s25 = int_to_ptr.hbm [resolvable:$true] %s18_s25 }
   0x3   :  { %s30_s22 = sshll.u32 %s324_s21, 4  ;;  %s325_s26 = smov 128   ;;  %s31_s22 = int_to_ptr.vmem [resolvable:$true] %s30_s22 }
   0x4   :  { %s326_s27 = smov 8   ;;  %s327_s28 = smov [#allocation2]  }
   0x5   :  { %36 = dma.hbm_to_vmem [thread:$0]  %s29_s20, 2048, %s31_s22, [#allocation6], %s325_s26, %s325_s26, %s326_s27  }
   0x6   :  { %s20_s29 = sshll.u32 %s327_s28, 4  ;;  %s43_s7 = sshll.u32 %s381_s3, 4  ;;  %s21_s29 = int_to_ptr.vmem [resolvable:$true] %s20_s29  ;;  %s44_s7 = int_to_ptr.hbm [resolvable:$true] %s43_s7 }
   0x7   :  { %23 = dma.hbm_to_vmem [thread:$0]  %s19_s25, 128, %s21_s29, [#allocation3]  }
   0x8   :  { %s328_s1 = smov [#allocation7]  }
   0x9   :  { %s45_s8 = sshll.u32 %s328_s1, 4  ;;  %s46_s8 = int_to_ptr.vmem [resolvable:$true] %s45_s8 }
   0xa   :  { %51 = dma.hbm_to_vmem [thread:$0]  %s44_s7, 2048, %s46_s8, [#allocation6], %s325_s26, %s325_s26, %s326_s27  }
   0xb   :  { %318 = dma.done.wait [#allocation3], 128  }
   0xc   :  { %319 = vsyncadd [#allocation3], 4294967168 }
   0xd   :  { %320 = dma.done.wait [#allocation6], 4096  }
   0xe   :  { %321 = vsyncadd [#allocation6], 4294963200  ;;  %v82_v0 = vld [vmem:[#allocation5 + $0x78] sm:$0xff]  ;;  %v81_v1 = vld [vmem:[#allocation5 + $0x70] sm:$0xff]  ;;  %s329_s10 = smov [#allocation8]   ;;  %s200_s14 = sshll.u32 %s383_s5, 4  ;;  %s201_s14 = int_to_ptr.hbm [resolvable:$true] %s200_s14 }
   0xf   :  { %87 = vmatpush.msra.mxu0 %v82_v0  ;;  %v80_v2 = vld [vmem:[#allocation5 + $0x68] sm:$0xff]  ;;  %v79_v3 = vld [vmem:[#allocation5 + $0x60] sm:$0xff]  ;;  %v78_v4 = vld [vmem:[#allocation5 + $0x58] sm:$0xff]  ;;  %s198_s11 = sshll.u32 %s329_s10, 4  ;;  %s199_s11 = int_to_ptr.vmem [resolvable:$true] %s198_s11 }
  0x10   :  { %v77_v5 = vld [vmem:[#allocation5 + $0x50] sm:$0xff]  ;;  %v76_v6 = vld [vmem:[#allocation5 + $0x48] sm:$0xff]  ;;  %v75_v7 = vld [vmem:[#allocation5 + $0x40] sm:$0xff] }
  0x11   :  { %88 = vmatpush.msra.mxu0 %v81_v1  ;;  %v74_v8 = vld [vmem:[#allocation5 + $0x38] sm:$0xff]  ;;  %v73_v9 = vld [vmem:[#allocation5 + $0x30] sm:$0xff]  ;;  %v72_v10 = vld [vmem:[#allocation5 + $0x28] sm:$0xff] }
  0x12   :  { %v71_v11 = vld [vmem:[#allocation5 + $0x20] sm:$0xff]  ;;  %v70_v12 = vld [vmem:[#allocation5 + $0x18] sm:$0xff]  ;;  %v69_v13 = vld [vmem:[#allocation5 + $0x10] sm:$0xff] }
  0x13   :  { %89 = vmatpush.msra.mxu0 %v80_v2  ;;  %v68_v14 = vld [vmem:[#allocation5 + $0x8] sm:$0xff]  ;;  %v67_v15 = vld [vmem:[#allocation5] sm:$0xff]  ;;  %v66_v16 = vld [vmem:[#allocation2] sm:$0xff] }
  0x14   :  { %v166_v17 = vld [vmem:[#allocation7 + $0x78] sm:$0xff]  ;;  %v165_v18 = vld [vmem:[#allocation7 + $0x70] sm:$0xff]  ;;  %v164_v19 = vld [vmem:[#allocation7 + $0x68] sm:$0xff] }
  0x15   :  { %90 = vmatpush.msra.mxu0 %v79_v3  ;;  %171 = vmatpush.msra.mxu1 %v166_v17  ;;  %v163_v20 = vld [vmem:[#allocation7 + $0x60] sm:$0xff]  ;;  %v218_v21 = vld [vmem:[%s380_s2] ss:$0 sm:$0xff]  ;;  %v161_v23 = vld [vmem:[#allocation7 + $0x50] sm:$0xff] }
  0x16   :  { %v162_v22 = vld [vmem:[#allocation7 + $0x58] sm:$0xff]  ;;  %v160_v25 = vld [vmem:[#allocation7 + $0x48] sm:$0xff]  ;;  %v159_v27 = vld [vmem:[#allocation7 + $0x40] sm:$0xff] }
  0x17   :  { %91 = vmatpush.msra.mxu0 %v78_v4  ;;  %172 = vmatpush.msra.mxu1 %v165_v18  ;;  %v158_v29 = vld [vmem:[#allocation7 + $0x38] sm:$0xff]  ;;  %v157_v31 = vld [vmem:[#allocation7 + $0x30] sm:$0xff]  ;;  %v156_v33 = vld [vmem:[#allocation7 + $0x28] sm:$0xff] }
  0x18   :  { %v155_v36 = vld [vmem:[#allocation7 + $0x20] sm:$0xff]  ;;  %v154_v39 = vld [vmem:[#allocation7 + $0x18] sm:$0xff]  ;;  %v153_v42 = vld [vmem:[#allocation7 + $0x10] sm:$0xff] }
  0x19   :  { %92 = vmatpush.msra.mxu0 %v77_v5  ;;  %173 = vmatpush.msra.mxu1 %v164_v19  ;;  %v152_v45 = vld [vmem:[#allocation7 + $0x8] sm:$0xff]  ;;  %v151_v47 = vld [vmem:[#allocation7] sm:$0xff] }
  0x1b   :  { %93 = vmatpush.msra.mxu0 %v76_v6  ;;  %174 = vmatpush.msra.mxu1 %v163_v20 }
  0x1d   :  { %94 = vmatpush.msra.mxu0 %v75_v7  ;;  %175 = vmatpush.msra.mxu1 %v162_v22 }
  0x1f   :  { %95 = vmatpush.msra.mxu0 %v74_v8  ;;  %176 = vmatpush.msra.mxu1 %v161_v23 }
  0x21   :  { %96 = vmatpush.msra.mxu0 %v73_v9  ;;  %177 = vmatpush.msra.mxu1 %v160_v25 }
  0x23   :  { %97 = vmatpush.msra.mxu0 %v72_v10  ;;  %178 = vmatpush.msra.mxu1 %v159_v27 }
  0x25   :  { %98 = vmatpush.msra.mxu0 %v71_v11  ;;  %179 = vmatpush.msra.mxu1 %v158_v29  ;;  %v219_v11 = vld [vmem:[%s382_s4] ss:$0 sm:$0xff] }
  0x27   :  { %99 = vmatpush.msra.mxu0 %v70_v12  ;;  %180 = vmatpush.msra.mxu1 %v157_v31 }
  0x29   :  { %100 = vmatpush.msra.mxu0 %v69_v13  ;;  %181 = vmatpush.msra.mxu1 %v156_v33 }
  0x2b   :  { %101 = vmatpush.msra.mxu0 %v68_v14  ;;  %182 = vmatpush.msra.mxu1 %v155_v36 }
  0x2d   :  { %102 = vmatpush.msra.mxu0 %v67_v15  ;;  %183 = vmatpush.msra.mxu1 %v154_v39 }
  0x2e   :  { %103 = vmatmul.f32.vlgmr.msra.gmra.mxu0 %v66_v16 }
  0x2f   :  { %184 = vmatpush.msra.mxu1 %v153_v42 }
  0x31   :  { %185 = vmatpush.msra.mxu1 %v152_v45 }
  0x33   :  { %186 = vmatpush.msra.mxu1 %v151_v47 }
  0xab   :  { %v104_v24 = vpop.f32.mrf.mxu0 }
  0xac   :  { %v105_v26 = vadd.f32 %v218_v21, %v104_v24 }
  0xae   :  { %v108_v28 = vmul.f32 0.70710677, %v105_v26  ;;  %v107_v8 = vmul.f32 0.5, %v105_v26 }
  0xb0   :  { %v109_v30 = vmul.f32 %v108_v28, %v108_v28 }
  0xb2   :  { %v110_v32 = vmin.f32 %v109_v30, 16.0 }
  0xb4   :  { %v111_v34 = vmul.f32 2.1237322e-06, %v110_v32  ;;  %v122_v35 = vmul.f32 3.8918573e-05, %v110_v32 }
  0xb6   :  { %v112_v37 = vadd.f32 0.00028619796, %v111_v34  ;;  %v123_v38 = vadd.f32 0.001143296, %v122_v35 }
  0xb8   :  { %v113_v40 = vmul.f32 %v112_v37, %v110_v32  ;;  %v124_v41 = vmul.f32 %v123_v38, %v110_v32 }
  0xba   :  { %v125_v43 = vadd.f32 0.014752088, %v124_v41  ;;  %v114_v44 = vadd.f32 0.0036580483, %v113_v40 }
  0xbc   :  { %v126_v46 = vmul.f32 %v125_v43, %v110_v32  ;;  %v115_v49 = vmul.f32 %v114_v44, %v110_v32 }
  0xbe   :  { %v127_v48 = vadd.f32 0.112945676, %v126_v46  ;;  %v116_v52 = vadd.f32 0.05243302, %v115_v49 }
  0xc0   :  { %v128_v50 = vmul.f32 %v127_v48, %v110_v32  ;;  %v117_v55 = vmul.f32 %v116_v52, %v110_v32 }
  0xc2   :  { %v129_v51 = vadd.f32 0.4994258, %v128_v50  ;;  %v118_v56 = vadd.f32 0.18741608, %v117_v55 }
  0xc4   :  { %v130_v53 = vmul.f32 %v129_v51, %v110_v32  ;;  %v119_v58 = vmul.f32 %v118_v56, %v110_v32 }
  0xc6   :  { %v131_v54 = vadd.f32 1.0, %v130_v53  ;;  %v120_v62 = vadd.f32 1.1283791, %v119_v58 }
  0xc8   :  { %220 = vrcp.f32 %v131_v54  ;;  %v143_v61 = vand.u32 2147483648, %v131_v54  ;;  %v141_v0 = vand.u32 2147483647, %v131_v54  ;;  %vm137_vm1 = vweird.f32 %v131_v54 }
  0xc9   :  { %v121_v3 = vmul.f32 %v120_v62, %v108_v28 }
  0xca   :  { %v144_v2 = vor.u32 1.1754944e-38, %v143_v61  ;;  %vm142_vm3 = vcmp.eq.f32.partialorder %v141_v0, 8.507059e+37 }
  0xce   :  { %v221_v57 = vpop.eup %220 }
  0xcf   :  { %v133_v59 = vmul.f32 %v221_v57, %v131_v54  ;;  %vm138_vm0 = vweird.f32 %v221_v57 }
  0xd0   :  { %vm139_vm2 = vmor %vm137_vm1, %vm138_vm0 }
  0xd1   :  { %v134_v60 = vsub.f32 1.0, %v133_v59 }
  0xd3   :  { %v135_v63 = vmul.f32 %v221_v57, %v134_v60 }
  0xd5   :  { %v136_v1 = vadd.f32 %v221_v57, %v135_v63 }
  0xd7   :  { %v140_v4 = vsel %vm139_vm2, %v221_v57, %v136_v1 }
  0xd8   :  { %v145_v5 = vsel %vm142_vm3, %v144_v2, %v140_v4 }
  0xd9   :  { %v146_v6 = vmul.f32 %v145_v5, %v121_v3 }
  0xdb   :  { %v211_v7 = vclamps-f32 %v146_v6, 1.0 }
  0xdd   :  { %v149_v9 = vadd.f32 1.0, %v211_v7 }
  0xdf   :  { %v150_v10 = vmul.f32 %v149_v9, %v107_v8 }
  0xe1   :  { %187 = vmatmul.f32.vlgmr.msra.gmra.mxu1 %v150_v10 }
 0x15e   :  { %v188_v12 = vpop.f32.mrf.mxu1 }
 0x15f   :  { %v189_v13 = vadd.f32 %v219_v11, %v188_v12 }
 0x161   :  { %v191_v14 = vmax.f32 %v189_v13, 0.0 }
 0x163   :  { %192 = vst [vmem:[#allocation8] sm:$0xff] %v191_v14 }
 0x164   :  { %203 = dma.vmem_to_hbm [thread:$0]  %s199_s11, 128, %s201_s14, [#allocation4]  }
 0x165   :  { %322 = dma.done.wait [#allocation4], 128  }
 0x166   :  { %323 = vsyncadd [#allocation4], 4294967168 }
 0x167   :  { %208 = vsyncpa [#allocation3], 1 }
 0x168   :  { %209 = vsyncpa [#allocation6], 1 }
 0x169   :  { %210 = vsyncpa [#allocation4], 1 }

</bundles_post_ra>
